<compile_context>
chip_gen: v6e
topology: v6e:2x2x1
jax: 0.10.0
libtpu: 0.0.40
codegen_flags: <defaults>
</compile_context>

<pallas_src>
import jax
import jax.numpy as jnp
from jax.experimental import pallas as pl
from jax.experimental.pallas import tpu as pltpu


def _round_up(x, m):
    return ((x + m - 1) // m) * m


# ---------------------------------------------------------------------------
# Fused kernel: Linear(1024 -> 3) + PReLU on a batch tile, plus the tiny
# replacement-table lookup (one-hot @ table) for the concatenated indices.
# ---------------------------------------------------------------------------
def _fused_kernel(alpha_ref, x_ref, w_ref, b_ref, idx_ref, table_ref,
                  o_ref, lut_ref):
    # ---- Linear + PReLU on this (tile_m, 1024) f32 tile ---------------------
    y = jnp.dot(x_ref[...], w_ref[...], preferred_element_type=jnp.float32)
    y = y + b_ref[...]
    a = alpha_ref[0]
    o_ref[...] = jnp.where(y > 0, y, a * y)   # PReLU: max(0,y) + a*min(0,y)

    # ---- Tiny table lookup ---------------------------------------------------
    # Recomputed every grid step (nanoseconds; every compute unit is idle —
    # this kernel is HBM-DMA bound) and written to a per-step slab so the
    # batch grid axis stays genuinely "parallel" (v7x megacore-safe, no
    # revisited output block).  Out-of-range indices yield zero rows.
    n = idx_ref.shape[0]
    ncls = table_ref.shape[0]
    iota = jax.lax.broadcasted_iota(jnp.int32, (n, ncls), 1)
    onehot = (idx_ref[...] == iota).astype(jnp.float32)
    lut_ref[0] = jnp.dot(onehot, table_ref[...],
                         preferred_element_type=jnp.float32)


# ---------------------------------------------------------------------------
# Module constants / params
# ---------------------------------------------------------------------------
REPLACEMENT_TABLE = jnp.array(
    [[0.96, 0.732, 0.85],
     [0.052, 0.288, 0.164],
     [0.469, 0.184, 0.357],
     [0.167, 0.865, 0.657],
     [0.908, 0.931, 0.709],
     [0.06, 0.73, 0.28]], dtype=jnp.float32)


def init_params(key):
    kw, kb = jax.random.split(key)
    # nn.Linear(1024, 3): weight (3, 1024), bias (3,); store weight transposed.
    bound = 1.0 / jnp.sqrt(1024.0)
    w = jax.random.uniform(kw, (3, 1024), jnp.float32, -bound, bound)
    b = jax.random.uniform(kb, (3,), jnp.float32, -bound, bound)
    alpha = jnp.array([0.25], dtype=jnp.float32)  # nn.PReLU() default init
    return {"w_t": w.T, "b": b.reshape(1, 3), "alpha": alpha}


def _pick_tile_m(B, tm):
    # f32 streaming: keep tiles a multiple of 8 sublanes, never bigger than
    # the (8-aligned) batch, capped at the requested tm.
    tile_m = min(_round_up(tm, 8), _round_up(B, 8))
    # If the whole batch fits in a single tile but is big enough that the
    # ~0.35us/step overhead is still well amortized, split it so the grid has
    # >= 2 steps and both v7x TensorCores get work (harmless on v5e/v6e).
    if B >= 512 and pl.cdiv(B, tile_m) < 2:
        tile_m = _round_up(-(-B // 2), 8)
    return tile_m


def bianhuan_forward(params, input1, input2, input3, *, tm=2048):
    x = input1                      # streamed in native f32: no cast, no pad
    B, K = x.shape
    w_t = params["w_t"].astype(jnp.float32)
    b = params["b"].astype(jnp.float32)
    alpha = params["alpha"].astype(jnp.float32)
    N = w_t.shape[1]

    idx_a = input2.reshape(-1).astype(jnp.int32)
    idx_b = input3.reshape(-1).astype(jnp.int32)
    n_a, n_b = idx_a.shape[0], idx_b.shape[0]
    idx = jnp.concatenate([idx_a, idx_b]).reshape(-1, 1)
    n = n_a + n_b
    table = REPLACEMENT_TABLE
    ncls, width = table.shape

    tile_m = _pick_tile_m(B, tm)
    num_tiles = pl.cdiv(B, tile_m)

    # VMEM budget: double-buffered f32 x tiles + lane-padded (tile_m, 128)
    # f32 output buffers + resident weight/bias/idx/table (+ headroom).
    # Clamp to 48 MiB so we never push against v7x's 64 MiB physical VMEM.
    vmem_bytes = 2 * tile_m * K * 4 + 2 * tile_m * 128 * 4 + 4 * 1024 * 1024
    vmem_bytes = int(min(max(vmem_bytes, 16 * 1024 * 1024), 48 * 1024 * 1024))

    out1, lut = pl.pallas_call(
        _fused_kernel,
        out_shape=(
            jax.ShapeDtypeStruct((B, N), jnp.float32),
            jax.ShapeDtypeStruct((num_tiles, n, width), jnp.float32),
        ),
        grid=(num_tiles,),
        in_specs=[
            pl.BlockSpec(memory_space=pltpu.SMEM),           # alpha scalar
            pl.BlockSpec((tile_m, K), lambda i: (i, 0)),     # x tile (streamed f32)
            pl.BlockSpec((K, N), lambda i: (0, 0)),          # weight^T (VMEM-resident)
            pl.BlockSpec((1, N), lambda i: (0, 0)),          # bias (VMEM-resident)
            pl.BlockSpec((n, 1), lambda i: (0, 0)),          # lookup indices
            pl.BlockSpec((ncls, width), lambda i: (0, 0)),   # replacement table
        ],
        out_specs=(
            pl.BlockSpec((tile_m, N), lambda i: (i, 0)),     # Linear+PReLU out
            pl.BlockSpec((1, n, width), lambda i: (i, 0, 0)),  # per-step lookup slab
        ),
        compiler_params=pltpu.CompilerParams(
            dimension_semantics=("parallel",),               # megacore shard on v7x
            vmem_limit_bytes=vmem_bytes),
    )(alpha, x, w_t, b, idx, table)

    lut0 = lut[0]
    result_tensor_1 = lut0[:n_a]
    result_tensor_2 = lut0[n_a:]
    return out1, result_tensor_1, result_tensor_2


if __name__ == "__main__":
    key = jax.random.PRNGKey(0)
    k_param, k_x = jax.random.split(key)
    params = init_params(k_param)

    B = 8
    input1 = jax.random.normal(k_x, (B, 1024), dtype=jnp.float32)
    input2 = jnp.array([0, 1, 2, 3, 4, 5], dtype=jnp.int32)
    input3 = jnp.array([5, 4, 2, 0], dtype=jnp.int32)

    out1, res1, res2 = bianhuan_forward(params, input1, input2, input3)
    jax.block_until_ready((out1, res1, res2))

    # --- reference checks (full f32 module semantics) -------------------------
    y_ref = jnp.dot(input1, params["w_t"],
                    precision=jax.lax.Precision.HIGHEST) + params["b"]
    y_ref = jnp.where(y_ref > 0, y_ref, params["alpha"][0] * y_ref)
    assert jnp.allclose(out1, y_ref, atol=1e-2, rtol=1e-2)

    r1_ref = REPLACEMENT_TABLE[input2]
    r2_ref = REPLACEMENT_TABLE[input3]
    assert jnp.allclose(res1, r1_ref)
    assert jnp.allclose(res2, r2_ref)
    assert out1.shape == (B, 3) and res1.shape == (6, 3) and res2.shape == (4, 3)

    # TODO(synk): out-of-range lookup indices produce zero rows instead of the
    # Python KeyError the PyTorch reference would raise.

    print("KERNEL_OK")
</pallas_src>

<mosaic_0001>
module attributes {stable_mosaic.version = 11 : i64} {
  func.func @_fused_kernel(%arg0: i32, %arg1: memref<1xf32, #tpu.memory_space<smem>>, %arg2: memref<8x1024xf32, #tpu.memory_space<vmem>>, %arg3: memref<1024x3xf32, #tpu.memory_space<vmem>>, %arg4: memref<1x3xf32, #tpu.memory_space<vmem>>, %arg5: memref<10x1xi32, #tpu.memory_space<vmem>>, %arg6: memref<6x3xf32, #tpu.memory_space<vmem>>, %arg7: memref<8x3xf32, #tpu.memory_space<vmem>>, %arg8: memref<1x10x3xf32, #tpu.memory_space<vmem>>) attributes {dimension_semantics = [#tpu.dimension_semantics<parallel>], iteration_bounds = array<i64: 1>, scalar_prefetch = 0 : i64, scratch_operands = 0 : i64, tpu.core_type = #tpu.core_type<tc>, window_params = [{transform_indices = @transform_0, window_bounds = array<i64: 1>}, {transform_indices = @transform_1, window_bounds = array<i64: 8, 1024>}, {pipeline_mode = #tpu.pipeline_mode<synchronous>, transform_indices = @transform_2, window_bounds = array<i64: 1024, 3>}, {pipeline_mode = #tpu.pipeline_mode<synchronous>, transform_indices = @transform_3, window_bounds = array<i64: 1, 3>}, {pipeline_mode = #tpu.pipeline_mode<synchronous>, transform_indices = @transform_4, window_bounds = array<i64: 10, 1>}, {pipeline_mode = #tpu.pipeline_mode<synchronous>, transform_indices = @transform_5, window_bounds = array<i64: 6, 3>}, {transform_indices = @transform_6, window_bounds = array<i64: 8, 3>}, {transform_indices = @transform_7, window_bounds = array<i64: 1, 10, 3>}]} {
    %c0 = arith.constant 0 : index
    %c0_0 = arith.constant 0 : index
    %0 = vector.load %arg2[%c0, %c0_0] : memref<8x1024xf32, #tpu.memory_space<vmem>>, vector<8x1024xf32>
    %c0_1 = arith.constant 0 : index
    %c0_2 = arith.constant 0 : index
    %1 = vector.load %arg3[%c0_1, %c0_2] : memref<1024x3xf32, #tpu.memory_space<vmem>>, vector<1024x3xf32>
    %cst = arith.constant dense<0.000000e+00> : vector<8x3xf32>
    %2 = tpu.matmul %0, %1, %cst {dimension_numbers = #tpu.dot_dimension_numbers<[1], [0], [0], [1], [0, 0, 1, 1], [], []>} : vector<8x1024xf32>, vector<1024x3xf32>, vector<8x3xf32> -> vector<8x3xf32>
    %c0_3 = arith.constant 0 : index
    %c0_4 = arith.constant 0 : index
    %3 = vector.load %arg4[%c0_3, %c0_4] : memref<1x3xf32, #tpu.memory_space<vmem>>, vector<1x3xf32>
    %4 = vector.broadcast %3 : vector<1x3xf32> to vector<8x3xf32>
    %5 = arith.addf %2, %4 : vector<8x3xf32>
    %c0_5 = arith.constant 0 : index
    %6 = memref.load %arg1[%c0_5] : memref<1xf32, #tpu.memory_space<smem>>
    %cst_6 = arith.constant 0.000000e+00 : f32
    %7 = vector.broadcast %cst_6 : f32 to vector<8x3xf32>
    %8 = arith.cmpf ogt, %5, %7 : vector<8x3xf32>
    %9 = vector.broadcast %6 : f32 to vector<8x3xf32>
    %10 = arith.mulf %9, %5 : vector<8x3xf32>
    %11 = arith.select %8, %5, %10 : vector<8x3xi1>, vector<8x3xf32>
    %c0_7 = arith.constant 0 : index
    %c0_8 = arith.constant 0 : index
    %12 = vector.load %arg7[%c0_7, %c0_8] : memref<8x3xf32, #tpu.memory_space<vmem>>, vector<8x3xf32>
    tpu.vector_store %arg7[%c0_7, %c0_8], %11 {strides = array<i32>} : memref<8x3xf32, #tpu.memory_space<vmem>>, vector<8x3xf32>,
    %13 = tpu.iota {dimensions = array<i32: 1>} : vector<10x6xi32>
    %c0_9 = arith.constant 0 : index
    %c0_10 = arith.constant 0 : index
    %14 = vector.load %arg5[%c0_9, %c0_10] : memref<10x1xi32, #tpu.memory_space<vmem>>, vector<10x1xi32>
    %15 = vector.broadcast %14 : vector<10x1xi32> to vector<10x6xi32>
    %16 = arith.cmpi eq, %15, %13 : vector<10x6xi32>
    %17 = arith.extui %16 : vector<10x6xi1> to vector<10x6xi32>
    %18 = arith.sitofp %17 : vector<10x6xi32> to vector<10x6xf32>
    %c0_11 = arith.constant 0 : index
    %c0_12 = arith.constant 0 : index
    %19 = vector.load %arg6[%c0_11, %c0_12] : memref<6x3xf32, #tpu.memory_space<vmem>>, vector<6x3xf32>
    %cst_13 = arith.constant dense<0.000000e+00> : vector<10x3xf32>
    %20 = tpu.matmul %18, %19, %cst_13 {dimension_numbers = #tpu.dot_dimension_numbers<[1], [0], [0], [1], [0, 0, 1, 1], [], []>} : vector<10x6xf32>, vector<6x3xf32>, vector<10x3xf32> -> vector<10x3xf32>
    %c0_14 = arith.constant 0 : index
    %c0_15 = arith.constant 0 : index
    %c0_16 = arith.constant 0 : index
    %21 = vector.load %arg8[%c0_14, %c0_15, %c0_16] : memref<1x10x3xf32, #tpu.memory_space<vmem>>, vector<1x10x3xf32>
    %22 = vector.shape_cast %21 : vector<1x10x3xf32> to vector<10x3xf32>
    %23 = vector.shape_cast %20 : vector<10x3xf32> to vector<1x10x3xf32>
    tpu.vector_store %arg8[%c0_14, %c0_15, %c0_16], %23 {strides = array<i32>} : memref<1x10x3xf32, #tpu.memory_space<vmem>>, vector<1x10x3xf32>,
    return
  }
  func.func @transform_0(%arg0: i32) -> i32 {
    %c0_i32 = arith.constant 0 : i32
    %c0_i32_0 = arith.constant 0 : i32
    return %c0_i32 : i32
  }
  func.func @transform_1(%arg0: i32) -> (i32, i32) {
    %c0_i32 = arith.constant 0 : i32
    %c0_i32_0 = arith.constant 0 : i32
    return %arg0, %c0_i32 : i32, i32
  }
  func.func @transform_2(%arg0: i32) -> (i32, i32) {
    %c0_i32 = arith.constant 0 : i32
    %c0_i32_0 = arith.constant 0 : i32
    %c0_i32_1 = arith.constant 0 : i32
    return %c0_i32, %c0_i32_0 : i32, i32
  }
  func.func @transform_3(%arg0: i32) -> (i32, i32) {
    %c0_i32 = arith.constant 0 : i32
    %c0_i32_0 = arith.constant 0 : i32
    %c0_i32_1 = arith.constant 0 : i32
    return %c0_i32, %c0_i32_0 : i32, i32
  }
  func.func @transform_4(%arg0: i32) -> (i32, i32) {
    %c0_i32 = arith.constant 0 : i32
    %c0_i32_0 = arith.constant 0 : i32
    %c0_i32_1 = arith.constant 0 : i32
    return %c0_i32, %c0_i32_0 : i32, i32
  }
  func.func @transform_5(%arg0: i32) -> (i32, i32) {
    %c0_i32 = arith.constant 0 : i32
    %c0_i32_0 = arith.constant 0 : i32
    %c0_i32_1 = arith.constant 0 : i32
    return %c0_i32, %c0_i32_0 : i32, i32
  }
  func.func @transform_6(%arg0: i32) -> (i32, i32) {
    %c0_i32 = arith.constant 0 : i32
    %c0_i32_0 = arith.constant 0 : i32
    return %arg0, %c0_i32 : i32, i32
  }
  func.func @transform_7(%arg0: i32) -> (i32, i32, i32) {
    %c0_i32 = arith.constant 0 : i32
    %c0_i32_0 = arith.constant 0 : i32
    %c0_i32_1 = arith.constant 0 : i32
    return %arg0, %c0_i32, %c0_i32_0 : i32, i32, i32
  }
}

</mosaic_0001>

<bundles_post_ra>
// kernel: tpu_custom_call.1
= control target key start
LH: loop header
LB: loop body
LE: loop exit
PB: predicated region body
PF: predicated region fallthrough
CT: control target
= control target key end

     0   :  { %v727_v0 = vmov 0   ;;  %vm480_vm0 = vcmask 1045504   ;;  %vm473_vm1 = vcmask 48128   ;;  %vm454_vm5 = vcmask 23552   ;;  %s1201_s4 = inlined_call_operand.vmem [shape: s32[10,1], index: 4, kind: input, shape index: {}]   ;;  %s1202_s2 = inlined_call_operand.vmem [shape: f32[1024,3], index: 2, kind: input, shape index: {}]   ;;  %s1203_s1 = inlined_call_operand.vmem [shape: f32[8,1024], index: 1, kind: input, shape index: {}]   ;;  %s1204_s5 = inlined_call_operand.vmem [shape: f32[6,3], index: 5, kind: input, shape index: {}]   ;;  %s1205_s3 = inlined_call_operand.vmem [shape: f32[1,3], index: 3, kind: input, shape index: {}]   ;;  %s1206_s0 = inlined_call_operand.<no memory space> [shape: f32[1], index: 0, kind: input, shape index: {}]   ;;  %s1207_s6 = inlined_call_operand.vmem [shape: f32[8,3], index: 6, kind: output, shape index: {0}]   ;;  %s1208_s7 = inlined_call_operand.vmem [shape: f32[1,10,3], index: 7, kind: output, shape index: {1}]  }
   0x1   :  { %726 = vset.pattern.permute.xlu0 %v727_v0  ;;  %v458_v1 = vld [vmem:[%s1201_s4] sm:$0xff]  ;;  %v459_v2 = vld [vmem:[%s1201_s4 + $0x8] sm:$0x3]  ;;  %v65_v3 = vld [vmem:[%s1202_s2 + $0xf8] sm:$0xff]  ;;  %vm560_vm6 = vcmask 17408  }
   0x2   :  { %461 = vperm.xlu0 %726, %v458_v1   ;;  %576 = vmatprep.subr.mxu0 %v65_v3  ;;  %v49_v4 = vld [vmem:[%s1202_s2 + $0x78] sm:$0xff]  ;;  %v64_v5 = vld [vmem:[%s1202_s2 + $0xf0] sm:$0xff]  ;;  %v63_v9 = vld [vmem:[%s1202_s2 + $0xe8] sm:$0xff] }
   0x3   :  { %v97_v6 = vld [vmem:[%s1202_s2 + $0x1f8] sm:$0xff]  ;;  %577 = vmatpush3.msra.mxu0 %v49_v4  ;;  %v48_v7 = vld [vmem:[%s1202_s2 + $0x70] sm:$0xff]  ;;  %v47_v11 = vld [vmem:[%s1202_s2 + $0x68] sm:$0xff] }
   0x4   :  { %611 = vmatprep.subr.mxu1 %v97_v6  ;;  %v81_v8 = vld [vmem:[%s1202_s2 + $0x178] sm:$0xff]  ;;  %578 = vmatprep.subr.mxu0 %v64_v5  ;;  %v96_v10 = vld [vmem:[%s1202_s2 + $0x1f0] sm:$0xff]  ;;  %v62_v13 = vld [vmem:[%s1202_s2 + $0xe0] sm:$0xff] }
   0x5   :  { %612 = vmatpush3.msra.mxu1 %v81_v8  ;;  %v80_v12 = vld [vmem:[%s1202_s2 + $0x170] sm:$0xff]  ;;  %579 = vmatpush3.msra.mxu0 %v48_v7  ;;  %v95_v14 = vld [vmem:[%s1202_s2 + $0x1e8] sm:$0xff]  ;;  %v46_v15 = vld [vmem:[%s1202_s2 + $0x60] sm:$0xff] }
   0x6   :  { %613 = vmatprep.subr.mxu1 %v96_v10  ;;  %464 = vperm.xlu0 %726, %v459_v2   ;;  %v79_v16 = vld [vmem:[%s1202_s2 + $0x168] sm:$0xff]  ;;  %v61_v17 = vld [vmem:[%s1202_s2 + $0xd8] sm:$0xff]  ;;  %v94_v18 = vld [vmem:[%s1202_s2 + $0x1e0] sm:$0xff] }
   0x7   :  { %580 = vmatprep.subr.mxu0 %v63_v9  ;;  %614 = vmatpush3.msra.mxu1 %v80_v12  ;;  %v45_v19 = vld [vmem:[%s1202_s2 + $0x58] sm:$0xff]  ;;  %v78_v20 = vld [vmem:[%s1202_s2 + $0x160] sm:$0xff]  ;;  %v60_v21 = vld [vmem:[%s1202_s2 + $0xd0] sm:$0xff] }
   0x8   :  { %581 = vmatpush3.msra.mxu0 %v47_v11  ;;  %615 = vmatprep.subr.mxu1 %v95_v14  ;;  %v93_v22 = vld [vmem:[%s1202_s2 + $0x1d8] sm:$0xff]  ;;  %v44_v23 = vld [vmem:[%s1202_s2 + $0x50] sm:$0xff]  ;;  %v59_v25 = vld [vmem:[%s1202_s2 + $0xc8] sm:$0xff] }
   0x9   :  { %582 = vmatprep.subr.mxu0 %v62_v13  ;;  %616 = vmatpush3.msra.mxu1 %v79_v16  ;;  %v77_v24 = vld [vmem:[%s1202_s2 + $0x158] sm:$0xff]  ;;  %v92_v26 = vld [vmem:[%s1202_s2 + $0x1d0] sm:$0xff]  ;;  %v43_v27 = vld [vmem:[%s1202_s2 + $0x48] sm:$0xff] }
   0xa   :  { %583 = vmatpush3.msra.mxu0 %v46_v15  ;;  %617 = vmatprep.subr.mxu1 %v94_v18  ;;  %v76_v28 = vld [vmem:[%s1202_s2 + $0x150] sm:$0xff]  ;;  %v58_v29 = vld [vmem:[%s1202_s2 + $0xc0] sm:$0xff]  ;;  %v91_v30 = vld [vmem:[%s1202_s2 + $0x1c8] sm:$0xff] }
   0xb   :  { %584 = vmatprep.subr.mxu0 %v61_v17  ;;  %618 = vmatpush3.msra.mxu1 %v78_v20  ;;  %v42_v31 = vld [vmem:[%s1202_s2 + $0x40] sm:$0xff]  ;;  %v75_v32 = vld [vmem:[%s1202_s2 + $0x148] sm:$0xff]  ;;  %v57_v33 = vld [vmem:[%s1202_s2 + $0xb8] sm:$0xff] }
   0xc   :  { %585 = vmatpush3.msra.mxu0 %v45_v19  ;;  %619 = vmatprep.subr.mxu1 %v93_v22  ;;  %v90_v34 = vld [vmem:[%s1202_s2 + $0x1c0] sm:$0xff]  ;;  %v41_v35 = vld [vmem:[%s1202_s2 + $0x38] sm:$0xff]  ;;  %v56_v37 = vld [vmem:[%s1202_s2 + $0xb0] sm:$0xff] }
   0xd   :  { %586 = vmatprep.subr.mxu0 %v60_v21  ;;  %620 = vmatpush3.msra.mxu1 %v77_v24  ;;  %v74_v36 = vld [vmem:[%s1202_s2 + $0x140] sm:$0xff]  ;;  %v89_v38 = vld [vmem:[%s1202_s2 + $0x1b8] sm:$0xff]  ;;  %v40_v39 = vld [vmem:[%s1202_s2 + $0x30] sm:$0xff] }
   0xe   :  { %587 = vmatpush3.msra.mxu0 %v44_v23  ;;  %621 = vmatprep.subr.mxu1 %v92_v26  ;;  %v73_v40 = vld [vmem:[%s1202_s2 + $0x138] sm:$0xff]  ;;  %v55_v41 = vld [vmem:[%s1202_s2 + $0xa8] sm:$0xff]  ;;  %v88_v42 = vld [vmem:[%s1202_s2 + $0x1b0] sm:$0xff] }
   0xf   :  { %588 = vmatprep.subr.mxu0 %v59_v25  ;;  %622 = vmatpush3.msra.mxu1 %v76_v28  ;;  %v39_v43 = vld [vmem:[%s1202_s2 + $0x28] sm:$0xff]  ;;  %v72_v44 = vld [vmem:[%s1202_s2 + $0x130] sm:$0xff]  ;;  %v54_v45 = vld [vmem:[%s1202_s2 + $0xa0] sm:$0xff] }
  0x10   :  { %589 = vmatpush3.msra.mxu0 %v43_v27  ;;  %623 = vmatprep.subr.mxu1 %v91_v30  ;;  %v87_v46 = vld [vmem:[%s1202_s2 + $0x1a8] sm:$0xff]  ;;  %v38_v47 = vld [vmem:[%s1202_s2 + $0x20] sm:$0xff]  ;;  %v53_v49 = vld [vmem:[%s1202_s2 + $0x98] sm:$0xff] }
  0x11   :  { %590 = vmatprep.subr.mxu0 %v58_v29  ;;  %624 = vmatpush3.msra.mxu1 %v75_v32  ;;  %v71_v48 = vld [vmem:[%s1202_s2 + $0x128] sm:$0xff]  ;;  %v86_v50 = vld [vmem:[%s1202_s2 + $0x1a0] sm:$0xff]  ;;  %v37_v51 = vld [vmem:[%s1202_s2 + $0x18] sm:$0xff] }
  0x12   :  { %591 = vmatpush3.msra.mxu0 %v42_v31  ;;  %625 = vmatprep.subr.mxu1 %v90_v34  ;;  %v70_v52 = vld [vmem:[%s1202_s2 + $0x120] sm:$0xff]  ;;  %v52_v53 = vld [vmem:[%s1202_s2 + $0x90] sm:$0xff]  ;;  %v85_v54 = vld [vmem:[%s1202_s2 + $0x198] sm:$0xff] }
  0x13   :  { %592 = vmatprep.subr.mxu0 %v57_v33  ;;  %626 = vmatpush3.msra.mxu1 %v74_v36  ;;  %v36_v55 = vld [vmem:[%s1202_s2 + $0x10] sm:$0xff]  ;;  %v69_v56 = vld [vmem:[%s1202_s2 + $0x118] sm:$0xff]  ;;  %v51_v57 = vld [vmem:[%s1202_s2 + $0x88] sm:$0xff] }
  0x14   :  { %593 = vmatpush3.msra.mxu0 %v41_v35  ;;  %627 = vmatprep.subr.mxu1 %v89_v38  ;;  %v84_v58 = vld [vmem:[%s1202_s2 + $0x190] sm:$0xff]  ;;  %v35_v59 = vld [vmem:[%s1202_s2 + $0x8] sm:$0xff]  ;;  %v50_v61 = vld [vmem:[%s1202_s2 + $0x80] sm:$0xff] }
  0x15   :  { %594 = vmatprep.subr.mxu0 %v56_v37  ;;  %628 = vmatpush3.msra.mxu1 %v73_v40  ;;  %v68_v60 = vld [vmem:[%s1202_s2 + $0x110] sm:$0xff]  ;;  %v83_v62 = vld [vmem:[%s1202_s2 + $0x188] sm:$0xff]  ;;  %v34_v63 = vld [vmem:[%s1202_s2] sm:$0xff] }
  0x16   :  { %595 = vmatpush3.msra.mxu0 %v40_v39  ;;  %629 = vmatprep.subr.mxu1 %v88_v42  ;;  %v67_v0 = vld [vmem:[%s1202_s2 + $0x108] sm:$0xff]  ;;  %v82_v2 = vld [vmem:[%s1202_s2 + $0x180] sm:$0xff]  ;;  %v129_v3 = vld [vmem:[%s1202_s2 + $0x2f8] sm:$0xff] }
  0x17   :  { %596 = vmatprep.subr.mxu0 %v55_v41  ;;  %630 = vmatpush3.msra.mxu1 %v72_v44  ;;  %v27_v1 = vld [vmem:[%s1203_s1 + $0x8] sm:$0xff]  ;;  %v26_v4 = vld [vmem:[%s1203_s1] sm:$0xff]  ;;  %v113_v6 = vld [vmem:[%s1202_s2 + $0x278] sm:$0xff] }
  0x18   :  { %597 = vmatpush3.msra.mxu0 %v39_v43  ;;  %631 = vmatprep.subr.mxu1 %v87_v46  ;;  %v66_v5 = vld [vmem:[%s1202_s2 + $0x100] sm:$0xff]  ;;  %v29_v7 = vld [vmem:[%s1203_s1 + $0x18] sm:$0xff]  ;;  %v128_v8 = vld [vmem:[%s1202_s2 + $0x2f0] sm:$0xff] }
  0x19   :  { %598 = vmatprep.subr.mxu0 %v54_v45  ;;  %632 = vmatpush3.msra.mxu1 %v71_v48  ;;  %v161_v9 = vld [vmem:[%s1202_s2 + $0x3f8] sm:$0xff]  ;;  %v28_v10 = vld [vmem:[%s1203_s1 + $0x10] sm:$0xff]  ;;  %v127_v13 = vld [vmem:[%s1202_s2 + $0x2e8] sm:$0xff] }
  0x1a   :  { %599 = vmatpush3.msra.mxu0 %v38_v47  ;;  %633 = vmatprep.subr.mxu1 %v86_v50  ;;  %v112_v11 = vld [vmem:[%s1202_s2 + $0x270] sm:$0xff]  ;;  %v145_v12 = vld [vmem:[%s1202_s2 + $0x378] sm:$0xff]  ;;  %v111_v15 = vld [vmem:[%s1202_s2 + $0x268] sm:$0xff] }
  0x1b   :  { %600 = vmatprep.subr.mxu0 %v53_v49  ;;  %634 = vmatpush3.msra.mxu1 %v70_v52  ;;  %v160_v14 = vld [vmem:[%s1202_s2 + $0x3f0] sm:$0xff]  ;;  %v126_v17 = vld [vmem:[%s1202_s2 + $0x2e0] sm:$0xff]  ;;  %v159_v18 = vld [vmem:[%s1202_s2 + $0x3e8] sm:$0xff] }
  0x1c   :  { %601 = vmatpush3.msra.mxu0 %v37_v51  ;;  %635 = vmatprep.subr.mxu1 %v85_v54  ;;  %v144_v16 = vld [vmem:[%s1202_s2 + $0x370] sm:$0xff]  ;;  %v110_v19 = vld [vmem:[%s1202_s2 + $0x260] sm:$0xff]  ;;  %v143_v20 = vld [vmem:[%s1202_s2 + $0x368] sm:$0xff] }
  0x1d   :  { %602 = vmatprep.subr.mxu0 %v52_v53  ;;  %636 = vmatpush3.msra.mxu1 %v69_v56  ;;  %v125_v21 = vld [vmem:[%s1202_s2 + $0x2d8] sm:$0xff]  ;;  %v158_v22 = vld [vmem:[%s1202_s2 + $0x3e0] sm:$0xff]  ;;  %v124_v25 = vld [vmem:[%s1202_s2 + $0x2d0] sm:$0xff] }
  0x1e   :  { %603 = vmatpush3.msra.mxu0 %v36_v55  ;;  %637 = vmatprep.subr.mxu1 %v84_v58  ;;  %v109_v23 = vld [vmem:[%s1202_s2 + $0x258] sm:$0xff]  ;;  %v142_v24 = vld [vmem:[%s1202_s2 + $0x360] sm:$0xff]  ;;  %v108_v27 = vld [vmem:[%s1202_s2 + $0x250] sm:$0xff] }
  0x1f   :  { %604 = vmatprep.subr.mxu0 %v51_v57  ;;  %638 = vmatpush3.msra.mxu1 %v68_v60  ;;  %v157_v26 = vld [vmem:[%s1202_s2 + $0x3d8] sm:$0xff]  ;;  %v123_v29 = vld [vmem:[%s1202_s2 + $0x2c8] sm:$0xff]  ;;  %v156_v30 = vld [vmem:[%s1202_s2 + $0x3d0] sm:$0xff] }
  0x20   :  { %605 = vmatpush3.msra.mxu0 %v35_v59  ;;  %639 = vmatprep.subr.mxu1 %v83_v62  ;;  %v141_v28 = vld [vmem:[%s1202_s2 + $0x358] sm:$0xff]  ;;  %v107_v31 = vld [vmem:[%s1202_s2 + $0x248] sm:$0xff]  ;;  %v140_v32 = vld [vmem:[%s1202_s2 + $0x350] sm:$0xff] }
  0x21   :  { %606 = vmatprep.subr.mxu0 %v50_v61  ;;  %640 = vmatpush3.msra.mxu1 %v67_v0  ;;  %v122_v33 = vld [vmem:[%s1202_s2 + $0x2c0] sm:$0xff]  ;;  %v155_v34 = vld [vmem:[%s1202_s2 + $0x3c8] sm:$0xff]  ;;  %v121_v37 = vld [vmem:[%s1202_s2 + $0x2b8] sm:$0xff] }
  0x22   :  { %607 = vmatpush3.msra.mxu0 %v34_v63  ;;  %233 = vmatprep.mubr.f32.mxu0 %v27_v1  ;;  %v106_v35 = vld [vmem:[%s1202_s2 + $0x240] sm:$0xff]  ;;  %v139_v36 = vld [vmem:[%s1202_s2 + $0x348] sm:$0xff]  ;;  %v105_v39 = vld [vmem:[%s1202_s2 + $0x238] sm:$0xff] }
  0x23   :  { %641 = vmatprep.subr.mxu1 %v82_v2  ;;  %646 = vmatprep.subr.mxu0 %v129_v3  ;;  %v154_v38 = vld [vmem:[%s1202_s2 + $0x3c0] sm:$0xff]  ;;  %v120_v41 = vld [vmem:[%s1202_s2 + $0x2b0] sm:$0xff]  ;;  %v153_v42 = vld [vmem:[%s1202_s2 + $0x3b8] sm:$0xff] }
  0x24   :  { %234 = vmatmul.mubr.f32.vlgmr.msra.gmra.mxu0 %v26_v4  ;;  %642 = vmatpush3.msra.mxu1 %v66_v5  ;;  %v138_v40 = vld [vmem:[%s1202_s2 + $0x340] sm:$0xff]  ;;  %v104_v43 = vld [vmem:[%s1202_s2 + $0x230] sm:$0xff]  ;;  %v137_v44 = vld [vmem:[%s1202_s2 + $0x338] sm:$0xff] }
  0x25   :  { %647 = vmatpush3.msra.mxu0 %v113_v6  ;;  %303 = vmatprep.mubr.f32.mxu1 %v29_v7  ;;  %v119_v45 = vld [vmem:[%s1202_s2 + $0x2a8] sm:$0xff]  ;;  %v152_v46 = vld [vmem:[%s1202_s2 + $0x3b0] sm:$0xff]  ;;  %v118_v49 = vld [vmem:[%s1202_s2 + $0x2a0] sm:$0xff] }
  0x26   :  { %648 = vmatprep.subr.mxu0 %v128_v8  ;;  %681 = vmatprep.subr.mxu1 %v161_v9  ;;  %v103_v47 = vld [vmem:[%s1202_s2 + $0x228] sm:$0xff]  ;;  %v136_v48 = vld [vmem:[%s1202_s2 + $0x330] sm:$0xff]  ;;  %v102_v51 = vld [vmem:[%s1202_s2 + $0x220] sm:$0xff] }
  0x27   :  { %304 = vmatmul.mubr.f32.vlgmr.msra.gmra.mxu1 %v28_v10  ;;  %649 = vmatpush3.msra.mxu0 %v112_v11  ;;  %v151_v50 = vld [vmem:[%s1202_s2 + $0x3a8] sm:$0xff]  ;;  %v117_v53 = vld [vmem:[%s1202_s2 + $0x298] sm:$0xff]  ;;  %v150_v54 = vld [vmem:[%s1202_s2 + $0x3a0] sm:$0xff] }
  0x28   :  { %682 = vmatpush3.msra.mxu1 %v145_v12  ;;  %650 = vmatprep.subr.mxu0 %v127_v13  ;;  %v135_v52 = vld [vmem:[%s1202_s2 + $0x328] sm:$0xff]  ;;  %v101_v55 = vld [vmem:[%s1202_s2 + $0x218] sm:$0xff]  ;;  %v134_v56 = vld [vmem:[%s1202_s2 + $0x320] sm:$0xff]  ;;  %v456_v12 = vlaneseq }
  0x29   :  { %683 = vmatprep.subr.mxu1 %v160_v14  ;;  %651 = vmatpush3.msra.mxu0 %v111_v15  ;;  %v116_v57 = vld [vmem:[%s1202_s2 + $0x290] sm:$0xff]  ;;  %v149_v58 = vld [vmem:[%s1202_s2 + $0x398] sm:$0xff]  ;;  %v115_v61 = vld [vmem:[%s1202_s2 + $0x288] sm:$0xff]  ;;  %v728_v15 = vmov 0.0  }
  0x2a   :  { %684 = vmatpush3.msra.mxu1 %v144_v16  ;;  %652 = vmatprep.subr.mxu0 %v126_v17  ;;  %v100_v59 = vld [vmem:[%s1202_s2 + $0x210] sm:$0xff]  ;;  %v133_v60 = vld [vmem:[%s1202_s2 + $0x318] sm:$0xff]  ;;  %v99_v63 = vld [vmem:[%s1202_s2 + $0x208] sm:$0xff]  ;;  %v457_v13 = vand.u32 127, %v456_v12 }
  0x2b   :  { %685 = vmatprep.subr.mxu1 %v159_v18  ;;  %653 = vmatpush3.msra.mxu0 %v110_v19  ;;  %v148_v62 = vld [vmem:[%s1202_s2 + $0x390] sm:$0xff]  ;;  %v114_v1 = vld [vmem:[%s1202_s2 + $0x280] sm:$0xff]  ;;  %v147_v2 = vld [vmem:[%s1202_s2 + $0x388] sm:$0xff] }
  0x2c   :  { %686 = vmatpush3.msra.mxu1 %v143_v20  ;;  %654 = vmatprep.subr.mxu0 %v125_v21  ;;  %v132_v0 = vld [vmem:[%s1202_s2 + $0x310] sm:$0xff]  ;;  %v98_v3 = vld [vmem:[%s1202_s2 + $0x200] sm:$0xff]  ;;  %v31_v4 = vld [vmem:[%s1203_s1 + $0x28] sm:$0xff] }
  0x2d   :  { %687 = vmatprep.subr.mxu1 %v158_v22  ;;  %655 = vmatpush3.msra.mxu0 %v109_v23  ;;  %v131_v5 = vld [vmem:[%s1202_s2 + $0x308] sm:$0xff]  ;;  %v30_v6 = vld [vmem:[%s1203_s1 + $0x20] sm:$0xff]  ;;  %v33_v8 = vld [vmem:[%s1203_s1 + $0x38] sm:$0xff] }
  0x2e   :  { %688 = vmatpush3.msra.mxu1 %v142_v24  ;;  %656 = vmatprep.subr.mxu0 %v124_v25  ;;  %v146_v7 = vld [vmem:[%s1202_s2 + $0x380] sm:$0xff]  ;;  %v32_v11 = vld [vmem:[%s1203_s1 + $0x30] sm:$0xff] }
  0x2f   :  { %689 = vmatprep.subr.mxu1 %v157_v26  ;;  %657 = vmatpush3.msra.mxu0 %v108_v27  ;;  %v130_v9 = vld [vmem:[%s1202_s2 + $0x300] sm:$0xff] }
  0x30   :  { %690 = vmatpush3.msra.mxu1 %v141_v28  ;;  %658 = vmatprep.subr.mxu0 %v123_v29  ;;  %v472_v10 = vld [vmem:[%s1204_s5] sm:$0x3f] }
  0x31   :  { %691 = vmatprep.subr.mxu1 %v156_v30  ;;  %659 = vmatpush3.msra.mxu0 %v107_v31  ;;  %v570_v23 = vld [vmem:[%s1205_s3] ss:$0 sm:$0xff] }
  0x32   :  { %692 = vmatpush3.msra.mxu1 %v140_v32  ;;  %660 = vmatprep.subr.mxu0 %v122_v33 }
  0x33   :  { %693 = vmatprep.subr.mxu1 %v155_v34  ;;  %661 = vmatpush3.msra.mxu0 %v106_v35  ;;  %v451_v35 = vstv %s1206_s0 }
  0x34   :  { %694 = vmatpush3.msra.mxu1 %v139_v36  ;;  %662 = vmatprep.subr.mxu0 %v121_v37 }
  0x35   :  { %695 = vmatprep.subr.mxu1 %v154_v38  ;;  %663 = vmatpush3.msra.mxu0 %v105_v39 }
  0x36   :  { %696 = vmatpush3.msra.mxu1 %v138_v40  ;;  %664 = vmatprep.subr.mxu0 %v120_v41 }
  0x37   :  { %697 = vmatprep.subr.mxu1 %v153_v42  ;;  %665 = vmatpush3.msra.mxu0 %v104_v43 }
  0x38   :  { %698 = vmatpush3.msra.mxu1 %v137_v44  ;;  %666 = vmatprep.subr.mxu0 %v119_v45 }
  0x39   :  { %699 = vmatprep.subr.mxu1 %v152_v46  ;;  %667 = vmatpush3.msra.mxu0 %v103_v47 }
  0x3a   :  { %700 = vmatpush3.msra.mxu1 %v136_v48  ;;  %668 = vmatprep.subr.mxu0 %v118_v49 }
  0x3b   :  { %701 = vmatprep.subr.mxu1 %v151_v50  ;;  %669 = vmatpush3.msra.mxu0 %v102_v51 }
  0x3c   :  { %702 = vmatpush3.msra.mxu1 %v135_v52  ;;  %670 = vmatprep.subr.mxu0 %v117_v53 }
  0x3d   :  { %703 = vmatprep.subr.mxu1 %v150_v54  ;;  %671 = vmatpush3.msra.mxu0 %v101_v55 }
  0x3e   :  { %704 = vmatpush3.msra.mxu1 %v134_v56  ;;  %672 = vmatprep.subr.mxu0 %v116_v57 }
  0x3f   :  { %705 = vmatprep.subr.mxu1 %v149_v58  ;;  %673 = vmatpush3.msra.mxu0 %v100_v59 }
  0x40   :  { %706 = vmatpush3.msra.mxu1 %v133_v60  ;;  %674 = vmatprep.subr.mxu0 %v115_v61 }
  0x41   :  { %707 = vmatprep.subr.mxu1 %v148_v62  ;;  %675 = vmatpush3.msra.mxu0 %v99_v63 }
  0x42   :  { %708 = vmatpush3.msra.mxu1 %v132_v0  ;;  %676 = vmatprep.subr.mxu0 %v114_v1 }
  0x43   :  { %709 = vmatprep.subr.mxu1 %v147_v2  ;;  %677 = vmatpush3.msra.mxu0 %v98_v3 }
  0x44   :  { %373 = vmatprep.mubr.f32.mxu0 %v31_v4  ;;  %710 = vmatpush3.msra.mxu1 %v131_v5 }
  0x45   :  { %374 = vmatmul.mubr.f32.vlgmr.msra.gmra.mxu0 %v30_v6  ;;  %711 = vmatprep.subr.mxu1 %v146_v7 }
  0x46   :  { %443 = vmatprep.mubr.f32.mxu1 %v33_v8  ;;  %712 = vmatpush3.msra.mxu1 %v130_v9 }
  0x47   :  { %719 = vmatprep.subr.msk.mxu0 %vm480_vm0, %v472_v10  ;;  %444 = vmatmul.mubr.f32.vlgmr.msra.gmra.mxu1 %v32_v11 }
  0x48   :  { %720 = vmatpush3.msk.msra.mxu0 %vm480_vm0, %v472_v10 }
  0x7d   :  { %v462_v14 = vpop.permute.xlu0 %461 }
  0x7e   :  { %vm466_vm2 = vcmp.eq.s32.totalorder %v462_v14, %v457_v13 }
  0x7f   :  { %v571_v16 = vsel %vm466_vm2, 1.0, %v728_v15 }
  0x80   :  { %721 = vmatprep.mubr.msk.f32.mxu0 %vm473_vm1, %v571_v16 }
  0x81   :  { %v465_v17 = vpop.permute.xlu0 %464 }
  0x82   :  { %vm467_vm3 = vcmp.eq.s32.totalorder %v465_v17, %v457_v13 }
  0x83   :  { %v572_v18 = vsel %vm467_vm3, 1.0, %v728_v15 }
  0x84   :  { %722 = vmatmul.mubr.msk.f32.vlgmr.msra.gmra.mxu0 %vm473_vm1, %v572_v18 }
  0xe4   :  { %v608_v19 = vpop.f32.mrf.mxu0 }
  0xe6   :  { %v609_v20 = vpop.f32.mrf.mxu0 }
  0xe7   :  { %v643_v21 = vpop.f32.mrf.mxu1  ;;  %v610_v22 = vadd.f32 %v609_v20, %v608_v19 }
  0xe9   :  { %v644_v24 = vpop.f32.mrf.mxu1  ;;  %v236_v25 = vadd.f32 %v610_v22, %v570_v23 }
  0xea   :  { %v645_v26 = vadd.f32 %v644_v24, %v643_v21 }
  0xec   :  { %v306_v28 = vadd.f32 %v645_v26, %v236_v25 }
 0x105   :  { %v678_v27 = vpop.f32.mrf.mxu0 }
 0x107   :  { %v679_v29 = vpop.f32.mrf.mxu0  ;;  %v713_v31 = vpop.f32.mrf.mxu1 }
 0x108   :  { %v680_v30 = vadd.f32 %v679_v29, %v678_v27 }
 0x109   :  { %v714_v33 = vpop.f32.mrf.mxu1 }
 0x10a   :  { %v376_v32 = vadd.f32 %v680_v30, %v306_v28  ;;  %v715_v34 = vadd.f32 %v714_v33, %v713_v31 }
 0x10c   :  { %v446_v36 = vadd.f32 %v715_v34, %v376_v32 }
 0x10e   :  { %vm450_vm4 = vcmp.gt.f32.partialorder %v446_v36, 0.0  ;;  %v452_v37 = vmul.f32 %v451_v35, %v446_v36 }
 0x110   :  { %v453_v38 = vsel %vm450_vm4, %v446_v36, %v452_v37 }
 0x111   :  { %455 = vst.msk [vmem:[%s1207_s6] sm:$0xff] %vm454_vm5, %v453_v38 }
 0x144   :  { %v723_v39 = vpop.f32.mrf.mxu0 }
 0x145   :  { %561 = vst.msk [vmem:[%s1208_s7 + $0x8] sm:$0x3] %vm560_vm6, %v723_v39 }
 0x146   :  { %v550_v40 = vpop.f32.mrf.mxu0 }
 0x147   :  { %559 = vst.msk [vmem:[%s1208_s7] sm:$0xff] %vm454_vm5, %v550_v40 }

</bundles_post_ra>
